<compile_context>
chip_gen: v6e
topology: v6e:2x2x1
jax: 0.10.0
libtpu: 0.0.40
codegen_flags: <defaults>
</compile_context>

<pallas_src>
import jax
import jax.numpy as jnp
from jax.experimental import pallas as pl
from jax.experimental.pallas import tpu as pltpu

import math

_C0 = float(math.sqrt(2.0 / math.pi))           # sqrt(2/pi)
_C1 = float(math.sqrt(2.0 / math.pi) * 0.044715)  # sqrt(2/pi) * 0.044715


def _gelu_kernel(x_ref, o_ref):
    # Upcast to f32 (no-op for f32 inputs; keeps v5e off bf16 VPU/EUP paths).
    x = x_ref[...].astype(jnp.float32)
    # Factored tanh-approx GELU: 5 mul + 2 add per element + 1 EUP tanh.
    x2 = x * x
    inner = x * (jnp.float32(_C0) + jnp.float32(_C1) * x2)
    t = jnp.tanh(inner)
    o_ref[...] = (x * (jnp.float32(0.5) * t + jnp.float32(0.5))).astype(o_ref.dtype)


def _round_up(n: int, m: int) -> int:
    return ((n + m - 1) // m) * m


def gelu(x: jax.Array, *, max_row_tile: int = 2048,
         vmem_budget_bytes: int = 28 << 20,
         donate_input: bool = False) -> jax.Array:
    """Tanh-approx GELU for arbitrary-shaped inputs (elementwise)."""
    orig_shape = x.shape
    hidden = orig_shape[-1]
    x2d = x.reshape(-1, hidden)
    rows = x2d.shape[0]
    itemsize = jnp.dtype(x.dtype).itemsize

    # ---- hidden (lane) axis tiling -------------------------------------
    # Only split hidden when even a minimal 8-row tile would blow the VMEM
    # budget (very wide activations).  Chunks are multiples of 128 so stores
    # stay lane-dense; tile_h == hidden (full dim) is always legal.
    if hidden <= 128 or 4 * 8 * hidden * itemsize <= vmem_budget_bytes:
        tile_h = hidden
    else:
        tile_h = max(128, (vmem_budget_bytes // (4 * 8 * itemsize) // 128) * 128)

    # ---- row (sublane) axis tiling -------------------------------------
    if rows <= 8:
        tile_r = rows  # full dim -> legal even when not a multiple of 8
    else:
        bytes_per_row = tile_h * itemsize
        budget_rows = max(8, vmem_budget_bytes // (4 * bytes_per_row))
        tile_r = int(min(max_row_tile, budget_rows, _round_up(rows, 8)))
        tile_r = max(8, (tile_r // 8) * 8)
        # Megacore guard: give both v7x TensorCores at least one row block.
        tile_r = min(tile_r, max(8, _round_up(pl.cdiv(rows, 2), 8)))

    grid = (pl.cdiv(rows, tile_r), pl.cdiv(hidden, tile_h))

    out = pl.pallas_call(
        _gelu_kernel,
        out_shape=jax.ShapeDtypeStruct((rows, hidden), x.dtype),
        grid_spec=pltpu.PrefetchScalarGridSpec(
            num_scalar_prefetch=0,
            grid=grid,
            in_specs=[pl.BlockSpec((tile_r, tile_h), lambda i, j: (i, j))],
            out_specs=pl.BlockSpec((tile_r, tile_h), lambda i, j: (i, j)),
        ),
        compiler_params=pltpu.CompilerParams(
            # Independent slabs: shardable across v7x's 2 TensorCores.
            dimension_semantics=("parallel", "parallel"),
            # Safe on all generations (v7x physical VMEM = 64 MiB).
            vmem_limit_bytes=40 << 20,
        ),
        input_output_aliases=({0: 0} if donate_input else {}),
    )(x2d)

    return out.reshape(orig_shape)


def gelu_ref(x: jax.Array) -> jax.Array:
    c = jnp.sqrt(jnp.asarray(2.0 / jnp.pi, dtype=jnp.float32))
    xf = x.astype(jnp.float32)
    y = 0.5 * xf * (1.0 + jnp.tanh(c * (xf + 0.044715 * jnp.power(xf, 3))))
    return y.astype(x.dtype)


if __name__ == "__main__":
    key = jax.random.PRNGKey(0)
    # Matches `x = torch.rand(2, 4, 768)` — uniform [0, 1), float32.
    x = jax.random.uniform(key, (2, 4, 768), dtype=jnp.float32)

    y = gelu(x)
    y = jax.block_until_ready(y)

    y_ref = gelu_ref(x)
    assert y.shape == x.shape and y.dtype == x.dtype
    assert jnp.allclose(y, y_ref, atol=1e-5, rtol=1e-5), "mismatch vs reference"

    print("KERNEL_OK")
</pallas_src>

<mosaic_0001>
module attributes {stable_mosaic.version = 11 : i64} {
  func.func @_gelu_kernel(%arg0: i32, %arg1: i32, %arg2: memref<8x768xf32, #tpu.memory_space<vmem>>, %arg3: memref<8x768xf32, #tpu.memory_space<vmem>>) attributes {dimension_semantics = [#tpu.dimension_semantics<parallel>, #tpu.dimension_semantics<parallel>], iteration_bounds = array<i64: 1, 1>, scalar_prefetch = 0 : i64, scratch_operands = 0 : i64, tpu.core_type = #tpu.core_type<tc>, window_params = [{transform_indices = @transform_0, window_bounds = array<i64: 8, 768>}, {transform_indices = @transform_1, window_bounds = array<i64: 8, 768>}]} {
    %c0 = arith.constant 0 : index
    %c0_0 = arith.constant 0 : index
    %0 = vector.load %arg2[%c0, %c0_0] : memref<8x768xf32, #tpu.memory_space<vmem>>, vector<8x768xf32>
    %1 = arith.mulf %0, %0 : vector<8x768xf32>
    %cst = arith.constant 0.0356774069 : f32
    %2 = vector.broadcast %cst : f32 to vector<8x768xf32>
    %3 = arith.mulf %2, %1 : vector<8x768xf32>
    %cst_1 = arith.constant 0.797884583 : f32
    %4 = vector.broadcast %cst_1 : f32 to vector<8x768xf32>
    %5 = arith.addf %4, %3 : vector<8x768xf32>
    %6 = arith.mulf %0, %5 : vector<8x768xf32>
    %7 = math.tanh %6 : vector<8x768xf32>
    %cst_2 = arith.constant 5.000000e-01 : f32
    %8 = vector.broadcast %cst_2 : f32 to vector<8x768xf32>
    %9 = arith.mulf %8, %7 : vector<8x768xf32>
    %cst_3 = arith.constant 5.000000e-01 : f32
    %10 = vector.broadcast %cst_3 : f32 to vector<8x768xf32>
    %11 = arith.addf %9, %10 : vector<8x768xf32>
    %12 = arith.mulf %0, %11 : vector<8x768xf32>
    %c0_4 = arith.constant 0 : index
    %c0_5 = arith.constant 0 : index
    %13 = vector.load %arg3[%c0_4, %c0_5] : memref<8x768xf32, #tpu.memory_space<vmem>>, vector<8x768xf32>
    tpu.vector_store %arg3[%c0_4, %c0_5], %12 {strides = array<i32>} : memref<8x768xf32, #tpu.memory_space<vmem>>, vector<8x768xf32>,
    return
  }
  func.func @transform_0(%arg0: i32, %arg1: i32) -> (i32, i32) {
    %c0_i32 = arith.constant 0 : i32
    return %arg0, %arg1 : i32, i32
  }
  func.func @transform_1(%arg0: i32, %arg1: i32) -> (i32, i32) {
    %c0_i32 = arith.constant 0 : i32
    return %arg0, %arg1 : i32, i32
  }
}

</mosaic_0001>

<bundles_post_ra>
// kernel: tpu_custom_call.1
= control target key start
LH: loop header
LB: loop body
LE: loop exit
PB: predicated region body
PF: predicated region fallthrough
CT: control target
= control target key end

     0   :  { %6 = vsyncpa [#allocation3], 0  ;;  %s172_s0 = inlined_call_operand.hbm [shape: f32[8,768], index: 0, kind: input, shape index: {}]   ;;  %s173_s1 = inlined_call_operand.hbm [shape: f32[8,768], index: 1, kind: output, shape index: {}]  }
   0x1   :  { %7 = vsyncpa [#allocation4], 0  ;;  %s154_s6 = smov [#allocation2]  }
   0x2   :  { %s14_s7 = sshll.u32 %s154_s6, 4  ;;  %s15_s7 = int_to_ptr.vmem [resolvable:$true] %s14_s7 }
   0x3   :  { %s118_s8 = scalar_lea.vmem %s15_s7, 768  ;;  %p123_p1 = scmp.lt.s32.totalorder %s15_s7, %s15_s7 }
   0x4   :  { %p119_p0 = scmp.ne.s32.totalorder %s15_s7, %s118_s8  ;;  %p124_p2 = scmp.lt.s32.totalorder %s118_s8, %s118_s8 }
   0x6   :  { %p125_p3 = por %p124_p2, %p123_p1 }
   0x8   :  { %p126_p4 = pnand %p125_p3, %p119_p0 }
   0xa   :  { %129 = shalt.err (!%p126_p4)
}
   0xb   :  { %17 = dma.hbm_to_vmem [thread:$0]  %s172_s0, 768, %s15_s7, [#allocation3]  }
   0xc   :  { %150 = dma.done.wait [#allocation3], 768  }
   0xd   :  { %151 = vsyncadd [#allocation3], 4294966528  ;;  %v21_v0 = vld [vmem:[#allocation2] sm:$0xff]  ;;  %v22_v1 = vld [vmem:[#allocation2 + $0x8] sm:$0xff]  ;;  %s155_s0 = smov [#allocation5]  }
   0xe   :  { %v23_v2 = vld [vmem:[#allocation2 + $0x10] sm:$0xff]  ;;  %v27_v3 = vmul.f32 %v21_v0, %v21_v0  ;;  %v28_v4 = vmul.f32 %v22_v1, %v22_v1  ;;  %v24_v6 = vld [vmem:[#allocation2 + $0x18] sm:$0xff]  ;;  %v25_v7 = vld [vmem:[#allocation2 + $0x20] sm:$0xff]  ;;  %s87_s11 = sshll.u32 %s155_s0, 4  ;;  %s88_s11 = int_to_ptr.vmem [resolvable:$true] %s87_s11 }
   0xf   :  { %v29_v5 = vmul.f32 %v23_v2, %v23_v2  ;;  %v26_v8 = vld [vmem:[#allocation2 + $0x28] sm:$0xff]  ;;  %v30_v9 = vmul.f32 %v24_v6, %v24_v6  ;;  %v31_v10 = vmul.f32 %v25_v7, %v25_v7  ;;  %s130_s12 = scalar_lea.vmem %s88_s11, 768  ;;  %p135_p6 = scmp.lt.s32.totalorder %s88_s11, %s88_s11 }
  0x10   :  { %v32_v11 = vmul.f32 %v26_v8, %v26_v8  ;;  %v33_v12 = vmul.f32 0.035677407, %v27_v3  ;;  %v34_v13 = vmul.f32 0.035677407, %v28_v4  ;;  %p131_p5 = scmp.ne.s32.totalorder %s88_s11, %s130_s12  ;;  %p136_p7 = scmp.lt.s32.totalorder %s130_s12, %s130_s12 }
  0x11   :  { %v35_v14 = vmul.f32 0.035677407, %v29_v5  ;;  %v36_v15 = vmul.f32 0.035677407, %v30_v9  ;;  %v37_v16 = vmul.f32 0.035677407, %v31_v10 }
  0x12   :  { %v38_v17 = vmul.f32 0.035677407, %v32_v11  ;;  %v39_v18 = vadd.f32 0.7978846, %v33_v12  ;;  %v40_v19 = vadd.f32 0.7978846, %v34_v13  ;;  %p137_p8 = por %p136_p7, %p135_p6 }
  0x13   :  { %v41_v20 = vadd.f32 0.7978846, %v35_v14  ;;  %v42_v21 = vadd.f32 0.7978846, %v36_v15  ;;  %v43_v22 = vadd.f32 0.7978846, %v37_v16 }
  0x14   :  { %v44_v23 = vadd.f32 0.7978846, %v38_v17  ;;  %v45_v24 = vmul.f32 %v39_v18, %v21_v0  ;;  %v46_v25 = vmul.f32 %v40_v19, %v22_v1  ;;  %p138_p9 = pnand %p137_p8, %p131_p5 }
  0x15   :  { %v47_v26 = vmul.f32 %v41_v20, %v23_v2  ;;  %v48_v27 = vmul.f32 %v42_v21, %v24_v6  ;;  %v49_v28 = vmul.f32 %v43_v22, %v25_v7 }
  0x16   :  { %98 = vtanh.f32 %v45_v24  ;;  %v50_v29 = vmul.f32 %v44_v23, %v26_v8 }
  0x17   :  { %100 = vtanh.f32 %v46_v25 }
  0x18   :  { %102 = vtanh.f32 %v47_v26 }
  0x19   :  { %104 = vtanh.f32 %v48_v27 }
  0x1a   :  { %106 = vtanh.f32 %v49_v28 }
  0x1b   :  { %108 = vtanh.f32 %v50_v29 }
  0x23   :  { %v99_v30 = vpop.eup %98 }
  0x24   :  { %v101_v31 = vpop.eup %100  ;;  %v57_v32 = vmul.f32 0.5, %v99_v30 }
  0x25   :  { %v103_v33 = vpop.eup %102  ;;  %v58_v34 = vmul.f32 0.5, %v101_v31 }
  0x26   :  { %v105_v35 = vpop.eup %104  ;;  %v63_v36 = vadd.f32 0.5, %v57_v32  ;;  %v59_v37 = vmul.f32 0.5, %v103_v33 }
  0x27   :  { %v107_v38 = vpop.eup %106  ;;  %v64_v39 = vadd.f32 0.5, %v58_v34  ;;  %v60_v40 = vmul.f32 0.5, %v105_v35 }
  0x28   :  { %v109_v41 = vpop.eup %108  ;;  %v69_v42 = vmul.f32 %v63_v36, %v21_v0  ;;  %v65_v43 = vadd.f32 0.5, %v59_v37  ;;  %v61_v44 = vmul.f32 0.5, %v107_v38 }
  0x29   :  { %v70_v45 = vmul.f32 %v64_v39, %v22_v1  ;;  %v66_v46 = vadd.f32 0.5, %v60_v40  ;;  %v62_v47 = vmul.f32 0.5, %v109_v41 }
  0x2a   :  { %75 = vst [vmem:[#allocation5] sm:$0xff] %v69_v42  ;;  %v71_v48 = vmul.f32 %v65_v43, %v23_v2  ;;  %v67_v49 = vadd.f32 0.5, %v61_v44 }
  0x2b   :  { %76 = vst [vmem:[#allocation5 + $0x8] sm:$0xff] %v70_v45  ;;  %v72_v50 = vmul.f32 %v66_v46, %v24_v6  ;;  %v68_v51 = vadd.f32 0.5, %v62_v47 }
  0x2c   :  { %77 = vst [vmem:[#allocation5 + $0x10] sm:$0xff] %v71_v48  ;;  %v73_v52 = vmul.f32 %v67_v49, %v25_v7 }
  0x2d   :  { %78 = vst [vmem:[#allocation5 + $0x18] sm:$0xff] %v72_v50  ;;  %v74_v53 = vmul.f32 %v68_v51, %v26_v8 }
  0x2e   :  { %79 = vst [vmem:[#allocation5 + $0x20] sm:$0xff] %v73_v52 }
  0x2f   :  { %80 = vst [vmem:[#allocation5 + $0x28] sm:$0xff] %v74_v53 }
  0x30   :  { %141 = shalt.err (!%p138_p9)
}
  0x31   :  { %90 = dma.vmem_to_hbm [thread:$0]  %s88_s11, 768, %s173_s1, [#allocation4]  }
  0x32   :  { %152 = dma.done.wait [#allocation4], 768  }
  0x33   :  { %153 = vsyncadd [#allocation4], 4294966528 }
  0x34   :  { %94 = vsyncpa [#allocation3], 1 }
  0x35   :  { %95 = vsyncpa [#allocation4], 1 }

</bundles_post_ra>
